<compile_context>
chip_gen: v7x
topology: tpu7x:2x2x1
jax: 0.10.0
libtpu: 0.0.40
codegen_flags: <defaults>
</compile_context>

<pallas_src>
from typing import NamedTuple, Optional

import jax
import jax.numpy as jnp
from jax.experimental import pallas as pl
from jax.experimental.pallas import tpu as pltpu


# ----------------------------- Pallas kernels ------------------------------
# Grid is (i, j, k).  The output block index depends only on (i, j), so the
# output tile stays resident across the k axis; k MUST remain the innermost
# grid axis and MUST be marked "arbitrary" (see dimension_semantics below).

def _linear_bias_kernel(x_ref, w_ref, b_ref, o_ref, acc_ref):
    # x_ref: (tm, tk), w_ref: (tk, tn), b_ref: (1, tn) f32, o_ref: (tm, tn)
    k = pl.program_id(2)

    @pl.when(k == 0)
    def _init():
        # Fold the bias into the accumulator init: saves the epilogue add and
        # an extra accumulator read during writeback.
        acc_ref[...] = jnp.broadcast_to(b_ref[...], acc_ref.shape).astype(jnp.float32)

    acc_ref[...] += jnp.dot(x_ref[...], w_ref[...],
                            preferred_element_type=jnp.float32)

    @pl.when(k == pl.num_programs(2) - 1)
    def _finalize():
        o_ref[...] = acc_ref[...].astype(o_ref.dtype)


def _linear_nobias_kernel(x_ref, w_ref, o_ref, acc_ref):
    k = pl.program_id(2)

    @pl.when(k == 0)
    def _init():
        acc_ref[...] = jnp.zeros_like(acc_ref)

    acc_ref[...] += jnp.dot(x_ref[...], w_ref[...],
                            preferred_element_type=jnp.float32)

    @pl.when(k == pl.num_programs(2) - 1)
    def _finalize():
        o_ref[...] = acc_ref[...].astype(o_ref.dtype)


# ------------------------------ host helpers -------------------------------

def _cdiv(a, b):
    return -(-a // b)


def _round_up(a, b):
    return _cdiv(a, b) * b


def _pad2d(a, rows, cols):
    r, c = a.shape
    if r == rows and c == cols:
        return a
    return jnp.pad(a, ((0, rows - r), (0, cols - c)))


def _balanced_tile(dim, max_tile, gran):
    """Tile size (multiple of `gran`, <= ~max_tile) that covers `dim` with the
    fewest tiles and minimal padding (avoids padding 300 -> 512)."""
    dim_r = _round_up(dim, gran)
    if dim_r <= max_tile:
        return dim_r
    ntiles = _cdiv(dim_r, max_tile)
    return _round_up(_cdiv(dim, ntiles), gran)


def _vmem_capacity_bytes():
    """Per-core VMEM capacity; conservative (v7x = 64 MiB) fallback."""
    try:
        info = pltpu.get_tpu_info()
        cap = getattr(info, "vmem_capacity_bytes", None)
        if cap:
            return int(cap)
    except Exception:
        pass
    return 64 << 20


class PreparedLinearWeights(NamedTuple):
    w_kn: jax.Array              # (Kp, Np) weight.T, padded, compute dtype
    bias: Optional[jax.Array]    # (1, Np) float32, or None
    din: int
    dout: int
    tn: int
    tk: int


def prepare_linear_weights(weight, bias=None, *, compute_dtype=None,
                           tn_max=512, tk_max=2048):
    """One-time weight prep (transpose + cast + pad) — hoist out of hot loops.

    weight: (dout, din) in PyTorch layout; bias: (dout,) or None.
    """
    dout, din = weight.shape
    w_kn = weight.T                       # MXU-native (K, N); done once here.
    if compute_dtype is not None:
        w_kn = w_kn.astype(compute_dtype)

    tn = _balanced_tile(dout, tn_max, 128)   # lane dim: multiples of 128
    tk = _balanced_tile(din, tk_max, 128)    # lane dim of x / sublane dim of W
    Kp, Np = _round_up(din, tk), _round_up(dout, tn)

    w_p = _pad2d(w_kn, Kp, Np)            # zero padding is exact for the dot
    b_p = None
    if bias is not None:
        b_p = _pad2d(bias.reshape(1, dout).astype(jnp.float32), 1, Np)
    return PreparedLinearWeights(w_p, b_p, din, dout, tn, tk)


# ------------------------------ main wrapper --------------------------------

def linear_pallas(x, weight=None, bias=None, *, compute_dtype=None,
                  tm_max=512, tn_max=512, tk_max=2048,
                  prepared: Optional[PreparedLinearWeights] = None):
    """y = x @ weight.T (+ bias).

    x: (*, din); weight: (dout, din) [PyTorch layout]; bias: (dout,) or None.
    compute_dtype: optionally cast x/W (e.g. jnp.bfloat16) before the MXU dot;
                   accumulation stays f32, output is cast back to x.dtype.
    prepared: output of prepare_linear_weights() to amortize weight prep.
    """
    if prepared is None:
        assert weight is not None
        prepared = prepare_linear_weights(weight, bias, compute_dtype=compute_dtype,
                                          tn_max=tn_max, tk_max=tk_max)
    w_p, b_p, din, dout, tn, tk = prepared

    *lead, din_x = x.shape
    assert din_x == din, f"in_features mismatch: {din_x} vs {din}"

    out_dtype = x.dtype
    x2d = x.reshape(-1, din)
    if x2d.dtype != w_p.dtype:
        x2d = x2d.astype(w_p.dtype)       # match the MXU operand dtype

    M, K = x2d.shape
    N = dout
    Kp, Np = w_p.shape

    # M-tile sublane granularity follows the packed vreg layout of the dtype.
    itemsize = jnp.dtype(x2d.dtype).itemsize
    sublane = {4: 8, 2: 16, 1: 32}.get(itemsize, 8)
    tm = _balanced_tile(M, tm_max, sublane)

    Mp = _round_up(M, tm)
    x_p = _pad2d(x2d, Mp, Kp)             # padded K contributes zeros; exact

    grid_m, grid_n, grid_k = Mp // tm, Np // tn, Kp // tk

    # v7x has 2 TensorCores: make sure at least one parallel axis has >= 2
    # tiles when it costs zero extra padding (no effect on v5e/v6e).
    if grid_m == 1 and grid_n == 1:
        if Np >= 256 and (Np // 2) % 128 == 0:
            tn, grid_n = Np // 2, 2
        elif Mp >= 2 * sublane and (Mp // 2) % sublane == 0:
            tm, grid_m = Mp // 2, 2

    grid = (grid_m, grid_n, grid_k)

    in_specs = [
        pl.BlockSpec((tm, tk), lambda i, j, k: (i, k)),
        pl.BlockSpec((tk, tn), lambda i, j, k: (k, j)),
    ]
    args = [x_p, w_p]
    if b_p is not None:
        in_specs.append(pl.BlockSpec((1, tn), lambda i, j, k: (0, j)))
        args.append(b_p)
        kernel = _linear_bias_kernel
    else:
        kernel = _linear_nobias_kernel

    # Generation-aware VMEM budget: double-buffered tiles + f32 accumulator.
    xb = jnp.dtype(x_p.dtype).itemsize
    wb = jnp.dtype(w_p.dtype).itemsize
    ob = jnp.dtype(out_dtype).itemsize
    working_set = (2 * tm * tk * xb + 2 * tk * tn * wb
                   + 2 * tm * tn * ob + tm * tn * 4 + 2 * tn * 4)
    ceiling = (_vmem_capacity_bytes() * 3) // 4          # headroom for scratch
    vmem_limit = int(min(max(2 * working_set, 32 << 20), ceiling))

    cost = pl.CostEstimate(
        flops=2 * M * N * K,
        transcendentals=0,
        bytes_accessed=(M * K) * xb + (K * N) * wb + M * N * ob
                       + (N * 4 if b_p is not None else 0),
    )

    out2d = pl.pallas_call(
        kernel,
        out_shape=jax.ShapeDtypeStruct((Mp, Np), out_dtype),
        grid_spec=pltpu.PrefetchScalarGridSpec(
            num_scalar_prefetch=0,
            grid=grid,
            in_specs=in_specs,
            out_specs=pl.BlockSpec((tm, tn), lambda i, j, k: (i, j)),
            scratch_shapes=[pltpu.VMEM((tm, tn), jnp.float32)],
        ),
        compiler_params=pltpu.CompilerParams(
            # k (reduction) MUST stay the innermost, "arbitrary" axis: the
            # output block is only written on the last k step.
            dimension_semantics=("parallel", "parallel", "arbitrary"),
            vmem_limit_bytes=vmem_limit,
        ),
        cost_estimate=cost,
    )(*args)

    out2d = out2d[:M, :N]
    return out2d.reshape(*lead, N)


# --------------------------- Parameter init (deterministic) ----------------

def kaiming_uniform(key, shape, din, dtype=jnp.float32):
    # Mirrors the module's init: uniform in (-1/sqrt(din), 1/sqrt(din)).
    # TODO(synk): exact torch.Generator bit-stream (manual_seed 92929292) is not reproducible in JAX.
    return (jax.random.uniform(key, shape, dtype=dtype) - 0.5) * 2.0 / jnp.sqrt(din)


def make_linear_params(key, in_features, out_features, use_bias=True):
    kw, kb = jax.random.split(key)
    weight = kaiming_uniform(kw, (out_features, in_features), din=in_features)
    bias = kaiming_uniform(kb, (out_features,), din=in_features) if use_bias else None
    return weight, bias


# ---------------------------------- main ------------------------------------

if __name__ == "__main__":
    key = jax.random.PRNGKey(0)
    k_x, k_p = jax.random.split(key)

    # Small shapes matching the module's typical use.
    batch, seq, in_features, out_features = 2, 8, 32, 64
    x = jax.random.normal(k_x, (batch, seq, in_features), dtype=jnp.float32)
    weight, bias = make_linear_params(k_p, in_features, out_features, use_bias=True)

    y = jax.block_until_ready(linear_pallas(x, weight, bias))
    y_ref = jnp.einsum("...k,nk->...n", x, weight) + bias
    assert y.shape == (batch, seq, out_features)
    assert jnp.allclose(y, y_ref, atol=1e-5, rtol=1e-5)

    # bias=False path.
    y_nb = jax.block_until_ready(linear_pallas(x, weight, None))
    assert jnp.allclose(y_nb, jnp.einsum("...k,nk->...n", x, weight),
                        atol=1e-5, rtol=1e-5)

    # Pre-prepared weights (hoisted transpose/pad/cast) must match exactly.
    prep = prepare_linear_weights(weight, bias)
    y_prep = jax.block_until_ready(linear_pallas(x, prepared=prep))
    assert jnp.allclose(y_prep, y, atol=0.0, rtol=0.0)

    # bf16 fast path: bf16 operands on the MXU, f32 accumulation.
    y_bf16 = jax.block_until_ready(
        linear_pallas(x, weight, bias, compute_dtype=jnp.bfloat16))
    assert y_bf16.dtype == x.dtype
    assert jnp.allclose(y_bf16, y_ref, atol=1e-1, rtol=1e-1)

    # Larger, ragged shapes: exercises balanced tiling, the multi-tile grid,
    # the K-loop accumulator, and zero-padded edge tiles.
    M2, K2, N2 = 300, 640, 320
    xb = jax.random.normal(jax.random.PRNGKey(1), (M2, K2), dtype=jnp.float32)
    wb = jax.random.normal(jax.random.PRNGKey(2), (N2, K2), dtype=jnp.float32) * 0.05
    bb = jax.random.normal(jax.random.PRNGKey(3), (N2,), dtype=jnp.float32)
    y2 = jax.block_until_ready(linear_pallas(xb, wb, bb))
    y2_ref = jnp.einsum("mk,nk->mn", xb, wb) + bb
    assert y2.shape == (M2, N2)
    assert jnp.allclose(y2, y2_ref, atol=5e-2, rtol=5e-2)

    print("KERNEL_OK")
</pallas_src>

<mosaic_0001>
module attributes {stable_mosaic.version = 11 : i64} {
  func.func @_linear_bias_kernel(%arg0: i32, %arg1: i32, %arg2: i32, %arg3: memref<8x128xf32, #tpu.memory_space<vmem>>, %arg4: memref<128x128xf32, #tpu.memory_space<vmem>>, %arg5: memref<1x128xf32, #tpu.memory_space<vmem>>, %arg6: memref<8x128xf32, #tpu.memory_space<vmem>>, %arg7: memref<8x128xf32, #tpu.memory_space<vmem>>) attributes {dimension_semantics = [#tpu.dimension_semantics<parallel>, #tpu.dimension_semantics<parallel>, #tpu.dimension_semantics<arbitrary>], iteration_bounds = array<i64: 2, 1, 1>, scalar_prefetch = 0 : i64, scratch_operands = 1 : i64, tpu.core_type = #tpu.core_type<tc>, window_params = [{transform_indices = @transform_0, window_bounds = array<i64: 8, 128>}, {transform_indices = @transform_1, window_bounds = array<i64: 128, 128>}, {transform_indices = @transform_2, window_bounds = array<i64: 1, 128>}, {transform_indices = @transform_3, window_bounds = array<i64: 8, 128>}]} {
    %c0_i32 = arith.constant 0 : i32
    %0 = arith.cmpi eq, %arg2, %c0_i32 : i32
    %1 = arith.extui %0 : i1 to i32
    %c0_i32_0 = arith.constant 0 : i32
    %2 = arith.cmpi ne, %1, %c0_i32_0 : i32
    scf.if %2 {
      %c0_10 = arith.constant 0 : index
      %c0_11 = arith.constant 0 : index
      %12 = vector.load %arg5[%c0_10, %c0_11] : memref<1x128xf32, #tpu.memory_space<vmem>>, vector<1x128xf32>
      %13 = vector.shape_cast %12 : vector<1x128xf32> to vector<1x128xf32>
      %14 = vector.broadcast %13 : vector<1x128xf32> to vector<8x128xf32>
      %c0_12 = arith.constant 0 : index
      %c0_13 = arith.constant 0 : index
      %15 = vector.load %arg7[%c0_12, %c0_13] : memref<8x128xf32, #tpu.memory_space<vmem>>, vector<8x128xf32>
      tpu.vector_store %arg7[%c0_12, %c0_13], %14 {strides = array<i32>} : memref<8x128xf32, #tpu.memory_space<vmem>>, vector<8x128xf32>,
    } else {
    }
    %c0 = arith.constant 0 : index
    %c0_1 = arith.constant 0 : index
    %3 = vector.load %arg7[%c0, %c0_1] : memref<8x128xf32, #tpu.memory_space<vmem>>, vector<8x128xf32>
    %c0_2 = arith.constant 0 : index
    %c0_3 = arith.constant 0 : index
    %4 = vector.load %arg3[%c0_2, %c0_3] : memref<8x128xf32, #tpu.memory_space<vmem>>, vector<8x128xf32>
    %c0_4 = arith.constant 0 : index
    %c0_5 = arith.constant 0 : index
    %5 = vector.load %arg4[%c0_4, %c0_5] : memref<128x128xf32, #tpu.memory_space<vmem>>, vector<128x128xf32>
    %cst = arith.constant dense<0.000000e+00> : vector<8x128xf32>
    %6 = tpu.matmul %4, %5, %cst {dimension_numbers = #tpu.dot_dimension_numbers<[1], [0], [0], [1], [0, 0, 1, 1], [], []>} : vector<8x128xf32>, vector<128x128xf32>, vector<8x128xf32> -> vector<8x128xf32>
    %7 = arith.addf %3, %6 : vector<8x128xf32>
    %c0_6 = arith.constant 0 : index
    %c0_7 = arith.constant 0 : index
    %8 = vector.load %arg7[%c0_6, %c0_7] : memref<8x128xf32, #tpu.memory_space<vmem>>, vector<8x128xf32>
    tpu.vector_store %arg7[%c0_6, %c0_7], %7 {strides = array<i32>} : memref<8x128xf32, #tpu.memory_space<vmem>>, vector<8x128xf32>,
    %c0_i32_8 = arith.constant 0 : i32
    %9 = arith.cmpi eq, %arg2, %c0_i32_8 : i32
    %10 = arith.extui %9 : i1 to i32
    %c0_i32_9 = arith.constant 0 : i32
    %11 = arith.cmpi ne, %10, %c0_i32_9 : i32
    scf.if %11 {
      %c0_10 = arith.constant 0 : index
      %c0_11 = arith.constant 0 : index
      %12 = vector.load %arg7[%c0_10, %c0_11] : memref<8x128xf32, #tpu.memory_space<vmem>>, vector<8x128xf32>
      %c0_12 = arith.constant 0 : index
      %c0_13 = arith.constant 0 : index
      %13 = vector.load %arg6[%c0_12, %c0_13] : memref<8x128xf32, #tpu.memory_space<vmem>>, vector<8x128xf32>
      tpu.vector_store %arg6[%c0_12, %c0_13], %12 {strides = array<i32>} : memref<8x128xf32, #tpu.memory_space<vmem>>, vector<8x128xf32>,
    } else {
    }
    return
  }
  func.func @transform_0(%arg0: i32, %arg1: i32, %arg2: i32) -> (i32, i32) {
    %c0_i32 = arith.constant 0 : i32
    return %arg0, %arg2 : i32, i32
  }
  func.func @transform_1(%arg0: i32, %arg1: i32, %arg2: i32) -> (i32, i32) {
    %c0_i32 = arith.constant 0 : i32
    return %arg2, %arg1 : i32, i32
  }
  func.func @transform_2(%arg0: i32, %arg1: i32, %arg2: i32) -> (i32, i32) {
    %c0_i32 = arith.constant 0 : i32
    %c0_i32_0 = arith.constant 0 : i32
    return %c0_i32, %arg1 : i32, i32
  }
  func.func @transform_3(%arg0: i32, %arg1: i32, %arg2: i32) -> (i32, i32) {
    %c0_i32 = arith.constant 0 : i32
    return %arg0, %arg1 : i32, i32
  }
}

</mosaic_0001>

<bundles_post_ra>
// kernel: tpu_custom_call.1
= control target key start
LH: loop header
LB: loop body
LE: loop exit
PB: predicated region body
PF: predicated region fallthrough
CT: control target
= control target key end

     0   :  { %8 = vsyncpa [#allocation4], 0  ;;  %s1051_s0 = inlined_call_operand.hbm [shape: f32[16,128], index: 0, kind: input, shape index: {}]   ;;  %s1052_s1 = inlined_call_operand.hbm [shape: f32[128,128], index: 1, kind: input, shape index: {}]   ;;  %s1053_s2 = inlined_call_operand.vmem [shape: f32[1,128], index: 2, kind: input, shape index: {}]   ;;  %s1054_s3 = inlined_call_operand.hbm [shape: f32[16,128], index: 3, kind: output, shape index: {}]  }
   0x1   :  { %10 = vsyncpa [#allocation4 + $0x1], 0 }
   0x2   :  { %11 = vsyncpa [#allocation7], 0 }
   0x3   :  { %12 = vsyncpa [#allocation5], 0 }
   0x4   :  { %14 = vsyncpa [#allocation5 + $0x1], 0  ;;  %s827_s12 = smov 0   ;;  %s829_s13 = smov 0  }
   0x5   :  { %s831_s14 = smov 0   ;;  %s833_s15 = smov 0  }
   0x6   :  { %s835_s16 = smov 0   ;;  %s837_s17 = smov 0  }
   0x7 LB: > { %s482_s18 = sadd.s32 4294967295, %s797_s17   ;;  %s483_s19 = sadd.s32 4294967294, %s797_s17   ;;  %s797_s17 = sphi %s837_s17, %s20_s17   ;;  %s793_s16 = sphi %s835_s16, %s1078_s16   ;;  %s789_s15 = sphi %s833_s15, %s1077_s15   ;;  %s785_s14 = sphi %s831_s14, %s1076_s14   ;;  %s781_s13 = sphi %s829_s13, %s1075_s13   ;;  %s777_s12 = sphi %s827_s12, %s1074_s12  }
   0x8   : > { %p61_p0 = scmp.ne.s32.totalorder %s781_s13, %s777_s12  ;;  %p861_p1 = scmp.eq.s32.totalorder %s482_s18, 0 }
   0x9   : > { %p865_p2 = scmp.eq.s32.totalorder %s482_s18, 1  ;;  %p147_p3 = scmp.eq.s32.totalorder %s483_s19, 1 }
   0xa   : > { %s1059_s20 = scalar_select %p861_p1, 1, 0 }
   0xb   : > { %s1060_s21 = scalar_select %p865_p2, 1, 0 }
   0xc   : > { %p871_p4 = por %p861_p1, %p61_p0  ;;  %p484_p5 = scmp.ge.s32.totalorder %s797_s17, 1 }
   0xd   : > { %p876_p6 = por %p147_p3, %p61_p0  ;;  %p154_p7 = scmp.lt.s32.totalorder %s797_s17, 3 }
   0xe   : > { %s1061_s22 = scalar_select %p871_p4, 1, 0 }
   0xf   : > { %s1062_s23 = scalar_select %p876_p6, 1, 0 }
  0x10   : > { %p881_p8 = pnand %p484_p5, %p154_p7  ;;  %s799_s25 = smov [#allocation6]  }
  0x11   : > { %s170_s26 = sshll.u32 %s799_s25, 4  ;;  %s39_s28 = sadd.s32 1, %s793_s16  ;;  %s171_s26 = int_to_ptr.vmem [resolvable:$true] %s170_s26 }
  0x12   : > { %s1063_s24 = scalar_select %p881_p8, 1, 0 }
  0x13   : > { %p583_p9 = pneg %p881_p8  ;;  %s653_s4 = scalar_lea.hbm %s1052_s1, 2048 }
  0x14   : > { %p654_p12 = scmp.ne.s32.totalorder %s1052_s1, %s653_s4  ;;  %p660_p5 = scmp.lt.u32.totalorder %s653_s4, %s1052_s1 }
  0x15   : > { %p890_p11 = pnand %p583_p9, %p861_p1 }
  0x17   : > { %p655_p13 = pneg %p890_p11 }
  0x19   : > { %p656_p0 = pnand %p655_p13, %p654_p12 }
  0x1b   : > { %p657_p3 = pneg %p656_p0 }
  0x1d   : > { %p662_p7 = pnand %p660_p5, %p657_p3 }
  0x1f   : > { %665 = shalt.err (!%p662_p7)
}
  0x20   : > { %s666_s9 = scalar_lea.vmem %s171_s26, 2048  ;;  %p674_p1 = scmp.lt.s32.totalorder %s171_s26, %s171_s26 }
  0x21   : > { %p667_p9 = scmp.ne.s32.totalorder %s171_s26, %s666_s9  ;;  %p675_p4 = scmp.lt.s32.totalorder %s666_s9, %s666_s9 }
  0x23   : > { %p669_p10 = pnand %p667_p9, %p655_p13  ;;  %p676_p8 = por %p675_p4, %p674_p1 }
  0x25   : > { %p670_p6 = pneg %p669_p10 }
  0x27   : > { %p677_p2 = pnand %p676_p8, %p670_p6 }
  0x29   : > { %680 = shalt.err (!%p677_p2)
}
  0x2a   : > { %s800_s10 = smov 128   ;;  %s801_s11 = smov 8  }
  0x2b   : > { %586 = dma.hbm_to_vmem [thread:$0]  (!%p890_p11), %s1052_s1, 2048, %s171_s26, [#allocation7], %s800_s10, %s800_s10, %s801_s11  }
  0x2c   : > { %p41_p1 = scmp.ge.s32.totalorder %s39_s28, 2  ;;  %s48_s25 = sadd.s32 1, %s785_s14 }
  0x2d   : > { %p55_p2 = scmp.ne.s32.totalorder %s785_s14, %s781_s13  ;;  %p56_p4 = scmp.eq.s32.totalorder %s797_s17, 0 }
  0x2e   : > { %s1080_s28 = smov (%p41_p1, %s39_s28), 0  ;;  %p1066_p8 = scmp.ne.s32.totalorder %s1060_s21, 0 }
  0x2f   : > { %p917_p6 = por %p56_p4, %p55_p2  ;;  %s43_s27 = ssub.s32 %s793_s16, %s1080_s28 }
  0x30   : > { %p923_p10 = por %p1066_p8, %p55_p2  ;;  %p596_p12 = scmp.lt.s32.totalorder %s797_s17, 2 }
  0x31   : > { %p46_p11 = scmp.eq.s32.totalorder %s43_s27, 0  ;;  %s190_s26 = sand.u32 1, %s785_s14  }
  0x32   : > { %s488_s4 = sshll.u32 %s190_s26, 3  ;;  %s489_s6 = sshll.u32 %s793_s16, 7 }
  0x33   : > { %s932_s5 = scalar_select %p46_p11, %s785_s14, %s48_s25  }
  0x34   : > { %s938_s9 = scalar_lea.hbm %s1051_s0, %s489_s6  ;;  %s194_s21 = scalar_lea.vmem [#allocation3], %s488_s4 }
  0x35   : > { %s202_s10 = sshll.u32 %s194_s21, 4  ;;  %p944_p13 = pnand %p596_p12, %p917_p6  ;;  %s940_s10 = int_to_ptr.vmem [resolvable:$true] %s202_s10 }
  0x36   : > { %s191_s18 = scalar_lea.sflag [#allocation4], %s190_s26  ;;  %s681_s19 = scalar_lea.hbm %s938_s9, 128 }
  0x37   : > { %p682_p0 = scmp.ne.s32.totalorder %s938_s9, %s681_s19  ;;  %p683_p3 = pneg %p944_p13 }
  0x38   : > { %s686_s4 = scalar_lea.hbm %s1051_s0, 256  ;;  %p687_p9 = scmp.lt.u32.totalorder %s938_s9, %s1051_s0 }
  0x39   : > { %p684_p5 = pnand %p683_p3, %p682_p0  ;;  %p688_p1 = scmp.lt.u32.totalorder %s686_s4, %s681_s19 }
  0x3a   : > { %p690_p4 = scmp.lt.u32.totalorder %s681_s19, %s938_s9 }
  0x3b   : > { %p685_p7 = pneg %p684_p5  ;;  %p689_p2 = por %p688_p1, %p687_p9 }
  0x3d   : > { %p691_p6 = por %p690_p4, %p689_p2 }
  0x3f   : > { %p692_p8 = pnand %p691_p6, %p685_p7 }
  0x41   : > { %695 = shalt.err (!%p692_p8)
}
  0x42   : > { %s696_s26 = scalar_lea.vmem %s940_s10, 128  ;;  %s802_s7 = smov [#allocation3]  }
  0x43   : > { %p697_p12 = scmp.ne.s32.totalorder %s940_s10, %s696_s26  ;;  %s701_s8 = sshll.u32 %s802_s7, 4  ;;  %s702_s8 = int_to_ptr.vmem [resolvable:$false] %s701_s8 }
  0x44   : > { %s703_s21 = scalar_lea.vmem %s702_s8, 256  ;;  %p704_p5 = scmp.lt.s32.totalorder %s940_s10, %s702_s8 }
  0x45   : > { %p699_p11 = pnand %p697_p12, %p683_p3  ;;  %p705_p9 = scmp.lt.s32.totalorder %s703_s21, %s696_s26 }
  0x47   : > { %p700_p0 = pneg %p699_p11  ;;  %p706_p1 = por %p705_p9, %p704_p5 }
  0x49   : > { %p707_p2 = pnand %p706_p1, %p700_p0 }
  0x4b   : > { %710 = shalt.err (!%p707_p2)
}
  0x4c   : > { %590 = dma.hbm_to_vmem [thread:$0]  (!%p944_p13), %s938_s9, 128, %s940_s10, %s191_s18  }
  0x4d   : > { %p1069_p7 = scmp.ne.s32.totalorder %s1063_s24, 0 }
  0x4e   : > { %s976_s19 = sand.u32 (!%p1069_p7), 1, %s781_s13   ;;  %p1070_p3 = scmp.ne.s32.totalorder (!%p1069_p7), %s1061_s22, 0 }
  0x4f   : > { %211 = sbr.rel (%p1069_p7) target bundleno = 353 (0x161), region = 32  ;;  %s491_s25 = sshll.u32 (!%p1069_p7), %s976_s19, 3 }
  0x50   : > { %s214_s27 = scalar_lea.sflag (!%p1069_p7), [#allocation4], %s976_s19  ;;  %s982_s4 = scalar_lea.vmem (!%p1069_p7), [#allocation3], %s491_s25 }
  0x56   : > { %764 = dma.done.wait (%p1070_p3), %s214_s27, 128  }
  0x57   : > { %766 = vsyncadd (%p1070_p3), %s214_s27, 4294967168  ;;  %p1071_p13 = scmp.ne.s32.totalorder %s1059_s20, 0 }
  0x59   : > { %768 = dma.done.wait (%p1071_p13), [#allocation7], 2048  }
  0x5a   : > { %770 = vsyncadd (%p1071_p13), [#allocation7], 4294965248  ;;  %v803_v0 = vmov 0.0|0.0   ;;  %vm804_vm0 = vmmov 0   ;;  %v805_v1 = vmov 0.0   ;;  %v265_v2 = vld [vmem:[#allocation6] sm:$0xff] }
  0x5b   : > { %551 = vmatprep.subr.bf16.mxu0 %v803_v0  ;;  %548 = vmatprep.mubr.msk.f32.mxu0 %vm804_vm0, %v805_v1  ;;  %v266_v3 = vld [vmem:[#allocation6 + $0x8] sm:$0xff]  ;;  %v267_v4 = vld [vmem:[#allocation6 + $0x10] sm:$0xff]  ;;  %v268_v6 = vld [vmem:[#allocation6 + $0x18] sm:$0xff]  ;;  %s496_s24 = sshll.u32 %s789_s15, 7  ;;  %s246_s9 = scalar_lea.vmem [#allocation8], %s491_s25 }
  0x5c   : > { %v552_v5 = vpack.c.bf16 %v266_v3, %v265_v2  ;;  %v555_v7 = vpack.c.bf16 %v268_v6, %v267_v4  ;;  %v269_v8 = vld [vmem:[#allocation6 + $0x20] sm:$0xff]  ;;  %v270_v9 = vld [vmem:[#allocation6 + $0x28] sm:$0xff]  ;;  %v271_v11 = vld [vmem:[#allocation6 + $0x30] sm:$0xff]  ;;  %s373_s10 = sshll.u32 %s246_s9, 4  ;;  %s1002_s29 = scalar_lea.hbm %s1054_s3, %s496_s24  ;;  %s1004_s10 = int_to_ptr.vmem [resolvable:$true] %s373_s10 }
  0x5d   : > { %v558_v10 = vpack.c.bf16 %v270_v9, %v269_v8  ;;  %v272_v12 = vld [vmem:[#allocation6 + $0x38] sm:$0xff]  ;;  %v273_v14 = vld [vmem:[#allocation6 + $0x40] sm:$0xff]  ;;  %v274_v15 = vld [vmem:[#allocation6 + $0x48] sm:$0xff]  ;;  %s359_s6 = scalar_lea.sflag [#allocation5], %s976_s19  ;;  %s711_s26 = scalar_lea.vmem %s1004_s10, 128 }
  0x5e   : > { %553 = vmatpush3.bf16.msra.mxu0 %v552_v5  ;;  %v561_v13 = vpack.c.bf16 %v272_v12, %v271_v11  ;;  %v564_v16 = vpack.c.bf16 %v274_v15, %v273_v14  ;;  %v275_v17 = vld [vmem:[#allocation6 + $0x50] sm:$0xff]  ;;  %v276_v18 = vld [vmem:[#allocation6 + $0x58] sm:$0xff]  ;;  %v277_v20 = vld [vmem:[#allocation6 + $0x60] sm:$0xff]  ;;  %p712_p4 = scmp.ne.s32.totalorder %s1004_s10, %s711_s26  ;;  %s806_s15 = smov [#allocation8]  }
  0x5f   : > { %554 = vmatprep.subr.bf16.mxu0 %v803_v0  ;;  %v567_v19 = vpack.c.bf16 %v276_v18, %v275_v17  ;;  %v278_v21 = vld [vmem:[#allocation6 + $0x68] sm:$0xff]  ;;  %v279_v23 = vld [vmem:[#allocation6 + $0x70] sm:$0xff]  ;;  %v280_v24 = vld [vmem:[#allocation6 + $0x78] sm:$0xff]  ;;  %s715_s7 = sshll.u32 %s806_s15, 4  ;;  %s716_s7 = int_to_ptr.vmem [resolvable:$false] %s715_s7 }
  0x60   : > { %v570_v22 = vpack.c.bf16 %v278_v21, %v277_v20  ;;  %v573_v25 = vpack.c.bf16 %v280_v24, %v279_v23  ;;  %v264_v26 = vld [vmem:[%s982_s4] sm:$0xff]  ;;  %p713_p6 = pnand %p712_p4, %p923_p10  ;;  %s717_s8 = scalar_lea.vmem %s716_s7, 256 }
  0x61   : > { %v494_v27 = vld [vmem:[%s1053_s2] ss:$0 sm:$0xff]  ;;  %p718_p12 = scmp.lt.s32.totalorder %s1004_s10, %s716_s7  ;;  %p719_p11 = scmp.lt.s32.totalorder %s717_s8, %s711_s26 }
  0x62   : > { %556 = vmatpush3.bf16.msra.mxu0 %v555_v7  ;;  %p714_p8 = pneg %p713_p6 }
  0x63   : > { %557 = vmatprep.subr.bf16.mxu0 %v803_v0  ;;  %p720_p0 = por %p719_p11, %p718_p12 }
  0x65   : > { %p721_p5 = pnand %p720_p0, %p714_p8 }
  0x66   : > { %559 = vmatpush3.bf16.msra.mxu0 %v558_v10 }
  0x67   : > { %560 = vmatprep.subr.bf16.mxu0 %v803_v0 }
  0x6a   : > { %562 = vmatpush3.bf16.msra.mxu0 %v561_v13 }
  0x6b   : > { %563 = vmatprep.subr.bf16.mxu0 %v803_v0 }
  0x6e   : > { %565 = vmatpush3.bf16.msra.mxu0 %v564_v16 }
  0x6f   : > { %566 = vmatprep.subr.bf16.mxu0 %v803_v0 }
  0x72   : > { %568 = vmatpush3.bf16.msra.mxu0 %v567_v19 }
  0x73   : > { %569 = vmatprep.subr.bf16.mxu0 %v803_v0 }
  0x76   : > { %571 = vmatpush3.bf16.msra.mxu0 %v570_v22 }
  0x77   : > { %572 = vmatprep.subr.bf16.mxu0 %v803_v0 }
  0x7a   : > { %574 = vmatpush3.bf16.msra.mxu0 %v573_v25 }
  0x7d   : > { %549 = vmatmul.mubr.f32.vlgmr.msra.gmra.mrb[0].mxu0 %v264_v26 }
 0x150   : > { %v347_v28 = vpop.f32.mrb[0].mxu0 }
 0x151   : > { %v351_v29 = vadd.f32 %v494_v27, %v347_v28  ;;  %v550_v30 = vpop.f32.mrb[1].mxu0 }
 0x153   : > { %357 = vst [vmem:[%s246_s9] sm:$0xff] %v351_v29 }
 0x154   : > { %724 = shalt.err (!%p721_p5)
}
 0x155   : > { %s725_s21 = scalar_lea.hbm %s1002_s29, 128  ;;  %s729_s27 = scalar_lea.hbm %s1054_s3, 256 }
 0x156   : > { %p726_p9 = scmp.ne.s32.totalorder %s1002_s29, %s725_s21  ;;  %p730_p7 = scmp.lt.u32.totalorder %s1002_s29, %s1054_s3 }
 0x157   : > { %p731_p3 = scmp.lt.u32.totalorder %s729_s27, %s725_s21  ;;  %p733_p4 = scmp.lt.u32.totalorder %s725_s21, %s1002_s29 }
 0x158   : > { %p727_p1 = pnand %p726_p9, %p923_p10 }
 0x159   : > { %p732_p13 = por %p731_p3, %p730_p7 }
 0x15a   : > { %p728_p2 = pneg %p727_p1 }
 0x15b   : > { %p734_p6 = por %p733_p4, %p732_p13 }
 0x15d   : > { %p735_p8 = pnand %p734_p6, %p728_p2 }
 0x15f   : > { %738 = shalt.err (!%p735_p8)
}
 0x160   : > { %581 = dma.vmem_to_hbm [thread:$0]  (%p923_p10), %s1004_s10, 128, %s1002_s29, %s359_s6  }
 0x161 PF: > { %s385_s22 = sand.u32 1, %s777_s12   ;;  %p1072_p12 = scmp.ne.s32.totalorder %s1062_s23, 0 }
 0x162   : > { %p1073_p11 = scmp.ge.s32.totalorder %s797_s17, 2  ;;  %s386_s24 = scalar_lea.sflag [#allocation5], %s385_s22 }
 0x164   : > { %p592_p0 = pnand %p1073_p11, %p1072_p12 }
 0x166   : > { %772 = dma.done.wait (!%p592_p0), %s386_s24, 128  }
 0x167   : > { %774 = vsyncadd (!%p592_p0), %s386_s24, 4294967168  ;;  %s20_s17 = sadd.s32 1, %s797_s17   ;;  %s1074_s12 = smov %s781_s13 }
 0x168   : > { %p17_p5 = scmp.ge.s32.totalorder %s20_s17, 4   ;;  %s1075_s13 = smov %s785_s14 }
 0x169   : > { %s1076_s14 = smov %s932_s5  ;;  %s1077_s15 = smov %s793_s16 }
 0x16a   : > { %s1078_s16 = smov %s1080_s28  ;;  %19 = sbr.rel (!%p17_p5) target bundleno = 7 (0x7), region = 93 }
 0x171   :  { %391 = vsyncpa [#allocation4], 1 }
 0x172   :  { %393 = vsyncpa [#allocation4 + $0x1], 1 }
 0x173   :  { %394 = vsyncpa [#allocation7], 1 }
 0x174   :  { %395 = vsyncpa [#allocation5], 1 }
 0x175   :  { %397 = vsyncpa [#allocation5 + $0x1], 1 }

</bundles_post_ra>
